<compile_context>
chip_gen: v6e
topology: v6e:2x2x1
jax: 0.10.0
libtpu: 0.0.40
codegen_flags: <defaults>
</compile_context>

<pallas_src>
import jax
import jax.numpy as jnp
from jax.experimental import pallas as pl
from jax.experimental.pallas import tpu as pltpu


def _round_up(x, m):
    return ((x + m - 1) // m) * m


def _dice_partial_sums_kernel(p_ref, m_ref, num_ref, den1_ref, den2_ref):
    """Grid = (row_blocks, col_blocks).

    Row blocks are independent ("parallel"); the column axis reduces H*W in
    chunks into per-row output blocks that stay resident across it.
    """
    k = pl.program_id(1)

    @pl.when(k == 0)
    def _():
        num_ref[...] = jnp.zeros_like(num_ref)
        den1_ref[...] = jnp.zeros_like(den1_ref)
        den2_ref[...] = jnp.zeros_like(den2_ref)

    p = p_ref[...].astype(jnp.float32)   # (block_rows, block_cols)
    m = m_ref[...].astype(jnp.float32)   # (block_rows, block_cols)

    num_ref[...] += jnp.sum(p * m, axis=-1, keepdims=True)
    den1_ref[...] += jnp.sum(p * p, axis=-1, keepdims=True)
    den2_ref[...] += jnp.sum(m * m, axis=-1, keepdims=True)


def dice_loss_multiclass(output, mask):
    """output, mask: (N, C, H, W). Returns scalar f32 loss."""
    N, C, H, W = output.shape
    assert mask.shape == output.shape
    NC, HW = N * C, H * W

    LANE, SUB = 128, 8

    # ---- tiling: lane-dense (N*C, H*W) blocks, ~2 MiB f32 per input block ----
    hw128 = _round_up(HW, LANE)
    max_block_cols = 64 * 1024                       # 256 KiB f32 per row chunk
    n_col_blocks = pl.cdiv(hw128, max_block_cols)
    block_cols = _round_up(pl.cdiv(hw128, n_col_blocks), LANE)
    hw_pad = block_cols * n_col_blocks

    target_block_elems = (2 * 1024 * 1024) // 4      # ~2 MiB f32 per input block
    block_rows = _round_up(
        min(NC, max(1, target_block_elems // block_cols)), SUB)
    nc_pad = _round_up(NC, block_rows)
    n_row_blocks = nc_pad // block_rows

    p = output.reshape(NC, HW)
    m = mask.reshape(NC, HW)
    if nc_pad != NC or hw_pad != HW:
        # Zero padding leaves all partial sums unchanged; padded rows are
        # sliced off before the final reduction below.
        p = jnp.pad(p, ((0, nc_pad - NC), (0, hw_pad - HW)))
        m = jnp.pad(m, ((0, nc_pad - NC), (0, hw_pad - HW)))

    in_spec = pl.BlockSpec((block_rows, block_cols), lambda i, k: (i, k))
    row_out_spec = pl.BlockSpec((block_rows, 1), lambda i, k: (i, 0))
    out_sds = jax.ShapeDtypeStruct((nc_pad, 1), jnp.float32)

    cost = pl.CostEstimate(
        flops=6 * NC * HW,          # 3 muls + 3 adds per element
        transcendentals=0,
        bytes_accessed=int(p.size * p.dtype.itemsize
                           + m.size * m.dtype.itemsize
                           + 3 * nc_pad * 4),
    )

    num, den1, den2 = pl.pallas_call(
        _dice_partial_sums_kernel,
        out_shape=(out_sds, out_sds, out_sds),
        grid_spec=pltpu.PrefetchScalarGridSpec(
            num_scalar_prefetch=0,
            grid=(n_row_blocks, n_col_blocks),
            in_specs=[in_spec, in_spec],
            out_specs=(row_out_spec, row_out_spec, row_out_spec),
        ),
        compiler_params=pltpu.CompilerParams(
            dimension_semantics=("parallel", "arbitrary")),
        cost_estimate=cost,
    )(p, m)

    # Tiny final reduction (N*C elements) done in plain JAX.
    eps = jnp.float32(1e-07)
    num = num[:NC, 0]
    den1 = den1[:NC, 0]
    den2 = den2[:NC, 0]
    dice = 2.0 * ((num + eps) / (den1 + den2 + eps))
    return 1.0 - jnp.sum(dice) / jnp.float32(N)


def _dice_loss_reference(output, mask):
    """Pure-JAX reference mirroring the intended PyTorch semantics."""
    N = output.shape[0]
    eps = 1e-07
    p = output.astype(jnp.float32)
    m = mask.astype(jnp.float32)
    num = jnp.sum(p * m, axis=(2, 3))     # (N, C)
    den1 = jnp.sum(p * p, axis=(2, 3))    # (N, C)
    den2 = jnp.sum(m * m, axis=(2, 3))    # (N, C)
    dice = 2.0 * ((num + eps) / (den1 + den2 + eps))
    dice_eso = jnp.sum(dice, axis=1)      # (N,)  sum over classes
    return 1.0 - jnp.sum(dice_eso) / N


if __name__ == "__main__":
    key = jax.random.PRNGKey(0)
    k1, k2 = jax.random.split(key)

    N, C, H, W = 2, 4, 16, 16
    # "output" acts like per-class probabilities; "mask" like a one-hot target.
    logits = jax.random.normal(k1, (N, C, H, W), dtype=jnp.float32)
    output = jax.nn.softmax(logits, axis=1)
    labels = jax.random.randint(k2, (N, H, W), 0, C)
    mask = jax.nn.one_hot(labels, C, axis=1, dtype=jnp.float32)  # (N, C, H, W)

    loss = dice_loss_multiclass(output, mask)
    loss = jax.block_until_ready(loss)

    ref = _dice_loss_reference(output, mask)
    assert jnp.allclose(loss, ref, rtol=1e-5, atol=1e-5), (loss, ref)

    print("KERNEL_OK")
</pallas_src>

<mosaic_0001>
module attributes {stable_mosaic.version = 11 : i64} {
  func.func @_dice_partial_sums_kernel(%arg0: i32, %arg1: i32, %arg2: memref<8x256xf32, #tpu.memory_space<vmem>>, %arg3: memref<8x256xf32, #tpu.memory_space<vmem>>, %arg4: memref<8x1xf32, #tpu.memory_space<vmem>>, %arg5: memref<8x1xf32, #tpu.memory_space<vmem>>, %arg6: memref<8x1xf32, #tpu.memory_space<vmem>>) attributes {dimension_semantics = [#tpu.dimension_semantics<parallel>, #tpu.dimension_semantics<arbitrary>], iteration_bounds = array<i64: 1, 1>, scalar_prefetch = 0 : i64, scratch_operands = 0 : i64, tpu.core_type = #tpu.core_type<tc>, window_params = [{transform_indices = @transform_0, window_bounds = array<i64: 8, 256>}, {transform_indices = @transform_1, window_bounds = array<i64: 8, 256>}, {transform_indices = @transform_2, window_bounds = array<i64: 8, 1>}, {transform_indices = @transform_3, window_bounds = array<i64: 8, 1>}, {transform_indices = @transform_4, window_bounds = array<i64: 8, 1>}]} {
    %c0_i32 = arith.constant 0 : i32
    %0 = arith.cmpi eq, %arg1, %c0_i32 : i32
    %1 = arith.extui %0 : i1 to i32
    %c0_i32_0 = arith.constant 0 : i32
    %2 = arith.cmpi ne, %1, %c0_i32_0 : i32
    scf.if %2 {
      %cst_18 = arith.constant 0.000000e+00 : f32
      %23 = vector.broadcast %cst_18 : f32 to vector<8x1xf32>
      %c0_19 = arith.constant 0 : index
      %c0_20 = arith.constant 0 : index
      %24 = vector.load %arg4[%c0_19, %c0_20] : memref<8x1xf32, #tpu.memory_space<vmem>>, vector<8x1xf32>
      tpu.vector_store %arg4[%c0_19, %c0_20], %23 {strides = array<i32>} : memref<8x1xf32, #tpu.memory_space<vmem>>, vector<8x1xf32>,
      %cst_21 = arith.constant 0.000000e+00 : f32
      %25 = vector.broadcast %cst_21 : f32 to vector<8x1xf32>
      %c0_22 = arith.constant 0 : index
      %c0_23 = arith.constant 0 : index
      %26 = vector.load %arg5[%c0_22, %c0_23] : memref<8x1xf32, #tpu.memory_space<vmem>>, vector<8x1xf32>
      tpu.vector_store %arg5[%c0_22, %c0_23], %25 {strides = array<i32>} : memref<8x1xf32, #tpu.memory_space<vmem>>, vector<8x1xf32>,
      %cst_24 = arith.constant 0.000000e+00 : f32
      %27 = vector.broadcast %cst_24 : f32 to vector<8x1xf32>
      %c0_25 = arith.constant 0 : index
      %c0_26 = arith.constant 0 : index
      %28 = vector.load %arg6[%c0_25, %c0_26] : memref<8x1xf32, #tpu.memory_space<vmem>>, vector<8x1xf32>
      tpu.vector_store %arg6[%c0_25, %c0_26], %27 {strides = array<i32>} : memref<8x1xf32, #tpu.memory_space<vmem>>, vector<8x1xf32>,
    } else {
    }
    %c0 = arith.constant 0 : index
    %c0_1 = arith.constant 0 : index
    %3 = vector.load %arg2[%c0, %c0_1] : memref<8x256xf32, #tpu.memory_space<vmem>>, vector<8x256xf32>
    %c0_2 = arith.constant 0 : index
    %c0_3 = arith.constant 0 : index
    %4 = vector.load %arg3[%c0_2, %c0_3] : memref<8x256xf32, #tpu.memory_space<vmem>>, vector<8x256xf32>
    %c0_4 = arith.constant 0 : index
    %c0_5 = arith.constant 0 : index
    %5 = vector.load %arg4[%c0_4, %c0_5] : memref<8x1xf32, #tpu.memory_space<vmem>>, vector<8x1xf32>
    %6 = arith.mulf %3, %4 : vector<8x256xf32>
    %cst = arith.constant dense<0.000000e+00> : vector<8xf32>
    %7 = vector.multi_reduction <add>, %6, %cst [1] : vector<8x256xf32> to vector<8xf32>
    %8 = vector.shape_cast %7 : vector<8xf32> to vector<8x1xf32>
    %9 = arith.addf %5, %8 : vector<8x1xf32>
    %c0_6 = arith.constant 0 : index
    %c0_7 = arith.constant 0 : index
    %10 = vector.load %arg4[%c0_6, %c0_7] : memref<8x1xf32, #tpu.memory_space<vmem>>, vector<8x1xf32>
    tpu.vector_store %arg4[%c0_6, %c0_7], %9 {strides = array<i32>} : memref<8x1xf32, #tpu.memory_space<vmem>>, vector<8x1xf32>,
    %c0_8 = arith.constant 0 : index
    %c0_9 = arith.constant 0 : index
    %11 = vector.load %arg5[%c0_8, %c0_9] : memref<8x1xf32, #tpu.memory_space<vmem>>, vector<8x1xf32>
    %12 = arith.mulf %3, %3 : vector<8x256xf32>
    %cst_10 = arith.constant dense<0.000000e+00> : vector<8xf32>
    %13 = vector.multi_reduction <add>, %12, %cst_10 [1] : vector<8x256xf32> to vector<8xf32>
    %14 = vector.shape_cast %13 : vector<8xf32> to vector<8x1xf32>
    %15 = arith.addf %11, %14 : vector<8x1xf32>
    %c0_11 = arith.constant 0 : index
    %c0_12 = arith.constant 0 : index
    %16 = vector.load %arg5[%c0_11, %c0_12] : memref<8x1xf32, #tpu.memory_space<vmem>>, vector<8x1xf32>
    tpu.vector_store %arg5[%c0_11, %c0_12], %15 {strides = array<i32>} : memref<8x1xf32, #tpu.memory_space<vmem>>, vector<8x1xf32>,
    %c0_13 = arith.constant 0 : index
    %c0_14 = arith.constant 0 : index
    %17 = vector.load %arg6[%c0_13, %c0_14] : memref<8x1xf32, #tpu.memory_space<vmem>>, vector<8x1xf32>
    %18 = arith.mulf %4, %4 : vector<8x256xf32>
    %cst_15 = arith.constant dense<0.000000e+00> : vector<8xf32>
    %19 = vector.multi_reduction <add>, %18, %cst_15 [1] : vector<8x256xf32> to vector<8xf32>
    %20 = vector.shape_cast %19 : vector<8xf32> to vector<8x1xf32>
    %21 = arith.addf %17, %20 : vector<8x1xf32>
    %c0_16 = arith.constant 0 : index
    %c0_17 = arith.constant 0 : index
    %22 = vector.load %arg6[%c0_16, %c0_17] : memref<8x1xf32, #tpu.memory_space<vmem>>, vector<8x1xf32>
    tpu.vector_store %arg6[%c0_16, %c0_17], %21 {strides = array<i32>} : memref<8x1xf32, #tpu.memory_space<vmem>>, vector<8x1xf32>,
    return
  }
  func.func @transform_0(%arg0: i32, %arg1: i32) -> (i32, i32) {
    %c0_i32 = arith.constant 0 : i32
    return %arg0, %arg1 : i32, i32
  }
  func.func @transform_1(%arg0: i32, %arg1: i32) -> (i32, i32) {
    %c0_i32 = arith.constant 0 : i32
    return %arg0, %arg1 : i32, i32
  }
  func.func @transform_2(%arg0: i32, %arg1: i32) -> (i32, i32) {
    %c0_i32 = arith.constant 0 : i32
    %c0_i32_0 = arith.constant 0 : i32
    return %arg0, %c0_i32 : i32, i32
  }
  func.func @transform_3(%arg0: i32, %arg1: i32) -> (i32, i32) {
    %c0_i32 = arith.constant 0 : i32
    %c0_i32_0 = arith.constant 0 : i32
    return %arg0, %c0_i32 : i32, i32
  }
  func.func @transform_4(%arg0: i32, %arg1: i32) -> (i32, i32) {
    %c0_i32 = arith.constant 0 : i32
    %c0_i32_0 = arith.constant 0 : i32
    return %arg0, %c0_i32 : i32, i32
  }
}

</mosaic_0001>

<bundles_post_ra>
// kernel: tpu_custom_call.1
= control target key start
LH: loop header
LB: loop body
LE: loop exit
PB: predicated region body
PF: predicated region fallthrough
CT: control target
= control target key end

     0   :  { %10 = vsyncpa [#allocation3], 0  ;;  %s203_s0 = inlined_call_operand.hbm [shape: f32[8,256], index: 0, kind: input, shape index: {}]   ;;  %s204_s1 = inlined_call_operand.hbm [shape: f32[8,256], index: 1, kind: input, shape index: {}]   ;;  %s205_s2 = inlined_call_operand.vmem [shape: f32[8,1], index: 2, kind: output, shape index: {0}]   ;;  %s206_s3 = inlined_call_operand.vmem [shape: f32[8,1], index: 3, kind: output, shape index: {1}]   ;;  %s207_s4 = inlined_call_operand.vmem [shape: f32[8,1], index: 4, kind: output, shape index: {2}]  }
   0x1   :  { %11 = vsyncpa [#allocation5], 0  ;;  %s136_s15 = smov [#allocation2]   ;;  %s137_s17 = smov [#allocation4]  }
   0x2   :  { %s18_s16 = sshll.u32 %s136_s15, 4  ;;  %s28_s18 = sshll.u32 %s137_s17, 4  ;;  %s19_s16 = int_to_ptr.vmem [resolvable:$true] %s18_s16  ;;  %s29_s18 = int_to_ptr.vmem [resolvable:$true] %s28_s18 }
   0x3   :  { %s100_s19 = scalar_lea.vmem %s19_s16, 256  ;;  %p105_p1 = scmp.lt.s32.totalorder %s19_s16, %s19_s16 }
   0x4   :  { %p101_p0 = scmp.ne.s32.totalorder %s19_s16, %s100_s19  ;;  %p106_p2 = scmp.lt.s32.totalorder %s100_s19, %s100_s19 }
   0x6   :  { %p107_p3 = por %p106_p2, %p105_p1 }
   0x8   :  { %p108_p4 = pnand %p107_p3, %p101_p0 }
   0xa   :  { %111 = shalt.err (!%p108_p4)
}
   0xb   :  { %21 = dma.hbm_to_vmem [thread:$0]  %s203_s0, 256, %s19_s16, [#allocation3]  }
   0xc   :  { %s120_s22 = scalar_lea.vmem %s29_s18, 256  ;;  %p125_p6 = scmp.lt.s32.totalorder %s29_s18, %s29_s18 }
   0xd   :  { %p121_p5 = scmp.ne.s32.totalorder %s29_s18, %s120_s22  ;;  %p126_p7 = scmp.lt.s32.totalorder %s120_s22, %s120_s22 }
   0xf   :  { %p127_p8 = por %p126_p7, %p125_p6 }
  0x11   :  { %p128_p9 = pnand %p127_p8, %p121_p5 }
  0x13   :  { %131 = shalt.err (!%p128_p9)
}
  0x14   :  { %31 = dma.hbm_to_vmem [thread:$0]  %s204_s1, 256, %s29_s18, [#allocation5]  }
  0x15   :  { %132 = dma.done.wait [#allocation3], 256  }
  0x16   :  { %133 = vsyncadd [#allocation3], 4294967040 }
  0x17   :  { %134 = dma.done.wait [#allocation5], 256  }
  0x18   :  { %135 = vsyncadd [#allocation5], 4294967040  ;;  %vm42_vm0 = vcmask 7168   ;;  %v138_v0 = vmov 0.0   ;;  %v46_v1 = vld [vmem:[#allocation2] sm:$0xff]  ;;  %v47_v2 = vld [vmem:[#allocation2 + $0x8] sm:$0xff] }
  0x19   :  { %43 = vst.msk [vmem:[%s205_s2] sm:$0xff] %vm42_vm0, %v138_v0  ;;  %44 = vst.msk [vmem:[%s206_s3] sm:$0xff] %vm42_vm0, %v138_v0  ;;  %v48_v3 = vld [vmem:[#allocation4] sm:$0xff]  ;;  %v49_v4 = vld [vmem:[#allocation4 + $0x8] sm:$0xff]  ;;  %v60_v9 = vmul.f32 %v46_v1, %v46_v1  ;;  %v61_v10 = vmul.f32 %v47_v2, %v47_v2 }
  0x1a   :  { %45 = vst.msk [vmem:[%s207_s4] sm:$0xff] %vm42_vm0, %v138_v0  ;;  %v51_v5 = vmul.f32 %v48_v3, %v46_v1  ;;  %v68_v6 = vmul.f32 %v48_v3, %v48_v3  ;;  %v52_v7 = vmul.f32 %v49_v4, %v47_v2  ;;  %v69_v8 = vmul.f32 %v49_v4, %v49_v4 }
  0x1b   :  { %v62_v13 = vadd.f32 %v61_v10, %v60_v9 }
  0x1c   :  { %v53_v11 = vadd.f32 %v52_v7, %v51_v5  ;;  %v70_v12 = vadd.f32 %v69_v8, %v68_v6 }
  0x1e   :  { %54 = vadd.xlane.f32.xlu0 %v53_v11  ;;  %71 = vadd.xlane.f32.xlu1 %v70_v12 }
  0x20   :  { %v50_v14 = vld [vmem:[%s205_s2] sm:$0xff] }
  0x21   :  { %v67_v15 = vld [vmem:[%s207_s4] sm:$0xff] }
  0x22   :  { %63 = vadd.xlane.f32.xlu0 %v62_v13  ;;  %v59_v20 = vld [vmem:[%s206_s3] sm:$0xff] }
  0xa7   :  { %v55_v16 = vpop.xlane.xlu0 %54  ;;  %v72_v17 = vpop.xlane.xlu1 %71 }
  0xa8   :  { %v56_v18 = vadd.f32 %v55_v16, %v50_v14  ;;  %v73_v19 = vadd.f32 %v72_v17, %v67_v15 }
  0xaa   :  { %58 = vst.msk [vmem:[%s205_s2] sm:$0xff] %vm42_vm0, %v56_v18  ;;  %74 = vst.msk [vmem:[%s207_s4] sm:$0xff] %vm42_vm0, %v73_v19 }
  0xab   :  { %v64_v21 = vpop.xlane.xlu0 %63 }
  0xac   :  { %v65_v22 = vadd.f32 %v64_v21, %v59_v20 }
  0xae   :  { %66 = vst.msk [vmem:[%s206_s3] sm:$0xff] %vm42_vm0, %v65_v22 }
  0xaf   :  { %87 = vsyncpa [#allocation3], 1 }
  0xb0   :  { %88 = vsyncpa [#allocation5], 1 }

</bundles_post_ra>
